<compile_context>
chip_gen: v6e
topology: v6e:2x2x1
jax: 0.10.0
libtpu: 0.0.40
codegen_flags: <defaults>
</compile_context>

<pallas_src>
import jax
import jax.numpy as jnp
from jax.experimental import pallas as pl
from jax.experimental.pallas import tpu as pltpu


def _round_up(x, m):
    return ((x + m - 1) // m) * m


def _linear_kernel(x_ref, w_ref, b_ref, o_ref, acc_ref):
    # x_ref: (tm, tk)  w_ref: (tk, N)  b_ref: (1, N) f32
    # o_ref: (tm, N)   acc_ref: (tm, N) f32 scratch
    k = pl.program_id(1)

    @pl.when(k == 0)
    def _():
        acc_ref[...] = jnp.zeros_like(acc_ref)

    acc_ref[...] += jnp.dot(
        x_ref[...], w_ref[...], preferred_element_type=jnp.float32
    )

    @pl.when(k == pl.num_programs(1) - 1)
    def _():
        o_ref[...] = (acc_ref[...] + b_ref[...]).astype(o_ref.dtype)


def _vmem_budget_and_limit():
    """Generation-aware VMEM budget (bytes) and explicit scoped-VMEM limit."""
    cap = None
    try:
        info = pltpu.get_tpu_info()
        cap = getattr(info, "vmem_capacity_bytes", None)
    except Exception:
        cap = None
    if not cap:
        cap = 64 * 1024 * 1024  # conservative: v7x per-TensorCore VMEM
    # Leave headroom for compiler scratch; the explicit limit is load-bearing
    # on v5e (default scoped VMEM is only 16 MiB).
    limit = min(int(cap * 3 // 4), 96 * 1024 * 1024)
    budget = int(limit * 3 // 4)
    return budget, limit


def _pick_tiles(B, K, N, itemsize, budget):
    """Pick (tm, tk, weight_buffer_count) under the VMEM budget."""
    # Prefer a fully-resident, single-buffered weight (fetched once).
    if K * N * itemsize <= budget // 2 or K % 128 != 0:
        # TODO(synk): if K is not a multiple of 128 and the weight is huge we
        # keep it resident anyway (cannot K-tile without padding garbage into
        # the accumulation).
        tk, w_bufs = K, 1
    else:
        # Weight too big for residency (matters on v7x's 64 MiB VMEM): stream
        # it along K. tk must divide K exactly — Pallas does not zero partial
        # input blocks, and a garbage K-tail would corrupt the accumulation.
        tk, w_bufs = K, 1
        cand = 4096
        while cand >= 128:
            if K % cand == 0 and 2 * cand * N * itemsize <= budget // 2:
                tk, w_bufs = cand, 2
                break
            cand //= 2

    def need(tm):
        return (2 * tm * tk * itemsize          # x tile (double-buffered)
                + w_bufs * tk * N * itemsize    # weight
                + N * 4                         # bias (resident)
                + 2 * tm * N * itemsize         # out tile (double-buffered)
                + tm * N * 4)                   # f32 accumulator scratch

    tm = 1024
    while tm > 16 and need(tm) > budget:
        tm //= 2
    # Large batches: keep >= 4 batch grid steps so each v7x TensorCore runs
    # >= 2 pipelined iterations (DMA stays hidden); small batches: one tile.
    tm = min(tm, max(256, _round_up(pl.cdiv(B, 4), 16)))
    tm = min(tm, _round_up(B, 8))
    return max(tm, 8), tk, w_bufs


def softmax_classifier_forward(x, weight_t, bias):
    """y = x @ weight_t + bias   (PyTorch nn.Linear forward, raw logits).

    x:        (B, feature_dim)
    weight_t: (feature_dim, class_num)  == torch Linear.weight.T
    bias:     (class_num,)
    """
    B, K = x.shape
    K2, N = weight_t.shape
    assert K == K2 and bias.shape == (N,)
    out_dtype = x.dtype
    itemsize = max(jnp.dtype(x.dtype).itemsize, jnp.dtype(weight_t.dtype).itemsize)

    budget, vmem_limit = _vmem_budget_and_limit()
    tm, tk, w_bufs = _pick_tiles(B, K, N, itemsize, budget)

    nb = pl.cdiv(B, tm)   # partial last batch block is masked by Pallas
    nk = pl.cdiv(K, tk)   # tk divides K by construction when nk > 1

    bias2d = bias.astype(jnp.float32).reshape(1, N)

    # Resident weight → single buffer (constant index_map, fetched once).
    w_spec_kwargs = {"pipeline_mode": pl.Buffered(1)} if w_bufs == 1 else {}

    cost = pl.CostEstimate(
        flops=2 * B * K * N,
        transcendentals=0,
        bytes_accessed=(B * K * jnp.dtype(x.dtype).itemsize
                        + K * N * jnp.dtype(weight_t.dtype).itemsize
                        + N * 4
                        + B * N * jnp.dtype(out_dtype).itemsize),
    )

    out = pl.pallas_call(
        _linear_kernel,
        out_shape=jax.ShapeDtypeStruct((B, N), out_dtype),
        grid_spec=pltpu.PrefetchScalarGridSpec(
            num_scalar_prefetch=0,
            grid=(nb, nk),
            in_specs=[
                # x streams over (batch, K) tiles in its native dtype.
                pl.BlockSpec((tm, tk), lambda i, k: (i, k)),
                # weight: resident (single-buffered) or streamed along K.
                pl.BlockSpec((tk, N), lambda i, k: (k, 0), **w_spec_kwargs),
                # bias: resident, single-buffered.
                pl.BlockSpec((1, N), lambda i, k: (0, 0),
                             pipeline_mode=pl.Buffered(1)),
            ],
            out_specs=pl.BlockSpec((tm, N), lambda i, k: (i, 0)),
            scratch_shapes=[pltpu.VMEM((tm, N), jnp.float32)],
        ),
        compiler_params=pltpu.CompilerParams(
            dimension_semantics=("parallel", "arbitrary"),
            vmem_limit_bytes=vmem_limit,
        ),
        cost_estimate=cost,
    )(x, weight_t, bias2d)

    return out


if __name__ == "__main__":
    # Small shapes consistent with the module (feature_dim matches the
    # module-level constant in CLSW_GAN.py; class_num kept small).
    batch = 24
    feature_dim = 2048
    class_num = 10

    key = jax.random.PRNGKey(0)
    kx, kw, kb = jax.random.split(key, 3)

    # Deterministic parameter init (mimics nn.Linear's uniform init range).
    bound = 1.0 / (feature_dim ** 0.5)
    x = jax.random.normal(kx, (batch, feature_dim), dtype=jnp.float32)
    weight_t = jax.random.uniform(
        kw, (feature_dim, class_num), minval=-bound, maxval=bound,
        dtype=jnp.float32)
    bias = jax.random.uniform(
        kb, (class_num,), minval=-bound, maxval=bound, dtype=jnp.float32)

    y = jax.block_until_ready(softmax_classifier_forward(x, weight_t, bias))
    assert y.shape == (batch, class_num)
    assert y.dtype == x.dtype

    # Reference: full-precision nn.Linear semantics.
    y_ref = x @ weight_t + bias[None, :]
    assert jnp.allclose(y, y_ref, atol=1e-2, rtol=1e-2), float(
        jnp.max(jnp.abs(y - y_ref)))

    print("KERNEL_OK")
</pallas_src>

<mosaic_0001>
module attributes {stable_mosaic.version = 11 : i64} {
  func.func @_linear_kernel(%arg0: i32, %arg1: i32, %arg2: memref<24x2048xf32, #tpu.memory_space<vmem>>, %arg3: memref<2048x10xf32, #tpu.memory_space<vmem>>, %arg4: memref<1x10xf32, #tpu.memory_space<vmem>>, %arg5: memref<24x10xf32, #tpu.memory_space<vmem>>, %arg6: memref<24x10xf32, #tpu.memory_space<vmem>>) attributes {dimension_semantics = [#tpu.dimension_semantics<parallel>, #tpu.dimension_semantics<arbitrary>], iteration_bounds = array<i64: 1, 1>, scalar_prefetch = 0 : i64, scratch_operands = 1 : i64, tpu.core_type = #tpu.core_type<tc>, window_params = [{transform_indices = @transform_0, window_bounds = array<i64: 24, 2048>}, {pipeline_mode = #tpu.pipeline_mode<synchronous>, transform_indices = @transform_1, window_bounds = array<i64: 2048, 10>}, {pipeline_mode = #tpu.pipeline_mode<synchronous>, transform_indices = @transform_2, window_bounds = array<i64: 1, 10>}, {transform_indices = @transform_3, window_bounds = array<i64: 24, 10>}]} {
    %c0_i32 = arith.constant 0 : i32
    %0 = arith.cmpi eq, %arg1, %c0_i32 : i32
    %1 = arith.extui %0 : i1 to i32
    %c0_i32_0 = arith.constant 0 : i32
    %2 = arith.cmpi ne, %1, %c0_i32_0 : i32
    scf.if %2 {
      %cst_10 = arith.constant 0.000000e+00 : f32
      %12 = vector.broadcast %cst_10 : f32 to vector<24x10xf32>
      %c0_11 = arith.constant 0 : index
      %c0_12 = arith.constant 0 : index
      %13 = vector.load %arg6[%c0_11, %c0_12] : memref<24x10xf32, #tpu.memory_space<vmem>>, vector<24x10xf32>
      tpu.vector_store %arg6[%c0_11, %c0_12], %12 {strides = array<i32>} : memref<24x10xf32, #tpu.memory_space<vmem>>, vector<24x10xf32>,
    } else {
    }
    %c0 = arith.constant 0 : index
    %c0_1 = arith.constant 0 : index
    %3 = vector.load %arg6[%c0, %c0_1] : memref<24x10xf32, #tpu.memory_space<vmem>>, vector<24x10xf32>
    %c0_2 = arith.constant 0 : index
    %c0_3 = arith.constant 0 : index
    %4 = vector.load %arg2[%c0_2, %c0_3] : memref<24x2048xf32, #tpu.memory_space<vmem>>, vector<24x2048xf32>
    %c0_4 = arith.constant 0 : index
    %c0_5 = arith.constant 0 : index
    %5 = vector.load %arg3[%c0_4, %c0_5] : memref<2048x10xf32, #tpu.memory_space<vmem>>, vector<2048x10xf32>
    %cst = arith.constant dense<0.000000e+00> : vector<24x10xf32>
    %6 = tpu.matmul %4, %5, %cst {dimension_numbers = #tpu.dot_dimension_numbers<[1], [0], [0], [1], [0, 0, 1, 1], [], []>} : vector<24x2048xf32>, vector<2048x10xf32>, vector<24x10xf32> -> vector<24x10xf32>
    %7 = arith.addf %3, %6 : vector<24x10xf32>
    %c0_6 = arith.constant 0 : index
    %c0_7 = arith.constant 0 : index
    %8 = vector.load %arg6[%c0_6, %c0_7] : memref<24x10xf32, #tpu.memory_space<vmem>>, vector<24x10xf32>
    tpu.vector_store %arg6[%c0_6, %c0_7], %7 {strides = array<i32>} : memref<24x10xf32, #tpu.memory_space<vmem>>, vector<24x10xf32>,
    %c0_i32_8 = arith.constant 0 : i32
    %9 = arith.cmpi eq, %arg1, %c0_i32_8 : i32
    %10 = arith.extui %9 : i1 to i32
    %c0_i32_9 = arith.constant 0 : i32
    %11 = arith.cmpi ne, %10, %c0_i32_9 : i32
    scf.if %11 {
      %c0_10 = arith.constant 0 : index
      %c0_11 = arith.constant 0 : index
      %12 = vector.load %arg6[%c0_10, %c0_11] : memref<24x10xf32, #tpu.memory_space<vmem>>, vector<24x10xf32>
      %c0_12 = arith.constant 0 : index
      %c0_13 = arith.constant 0 : index
      %13 = vector.load %arg4[%c0_12, %c0_13] : memref<1x10xf32, #tpu.memory_space<vmem>>, vector<1x10xf32>
      %14 = vector.broadcast %13 : vector<1x10xf32> to vector<24x10xf32>
      %15 = arith.addf %12, %14 : vector<24x10xf32>
      %c0_14 = arith.constant 0 : index
      %c0_15 = arith.constant 0 : index
      %16 = vector.load %arg5[%c0_14, %c0_15] : memref<24x10xf32, #tpu.memory_space<vmem>>, vector<24x10xf32>
      tpu.vector_store %arg5[%c0_14, %c0_15], %15 {strides = array<i32>} : memref<24x10xf32, #tpu.memory_space<vmem>>, vector<24x10xf32>,
    } else {
    }
    return
  }
  func.func @transform_0(%arg0: i32, %arg1: i32) -> (i32, i32) {
    %c0_i32 = arith.constant 0 : i32
    return %arg0, %arg1 : i32, i32
  }
  func.func @transform_1(%arg0: i32, %arg1: i32) -> (i32, i32) {
    %c0_i32 = arith.constant 0 : i32
    %c0_i32_0 = arith.constant 0 : i32
    return %arg1, %c0_i32 : i32, i32
  }
  func.func @transform_2(%arg0: i32, %arg1: i32) -> (i32, i32) {
    %c0_i32 = arith.constant 0 : i32
    %c0_i32_0 = arith.constant 0 : i32
    %c0_i32_1 = arith.constant 0 : i32
    return %c0_i32, %c0_i32_0 : i32, i32
  }
  func.func @transform_3(%arg0: i32, %arg1: i32) -> (i32, i32) {
    %c0_i32 = arith.constant 0 : i32
    %c0_i32_0 = arith.constant 0 : i32
    return %arg0, %c0_i32 : i32, i32
  }
}

</mosaic_0001>

<bundles_post_ra>
// kernel: tpu_custom_call.1
= control target key start
LH: loop header
LB: loop body
LE: loop exit
PB: predicated region body
PF: predicated region fallthrough
CT: control target
= control target key end

     0   :  { %vm18_vm0 = vcmask 80896   ;;  %s2283_s1 = inlined_call_operand.vmem [shape: f32[2048,10], index: 1, kind: input, shape index: {}]   ;;  %s2284_s0 = inlined_call_operand.vmem [shape: f32[24,2048], index: 0, kind: input, shape index: {}]   ;;  %s2285_s2 = inlined_call_operand.vmem [shape: f32[1,10], index: 2, kind: input, shape index: {}]   ;;  %s2286_s3 = inlined_call_operand.vmem [shape: f32[24,10], index: 3, kind: output, shape index: {}]  }
   0x1   :  { %v104_v0 = vld [vmem:[%s2283_s1 + $0xf8] sm:$0xff]  ;;  %v103_v4 = vld [vmem:[%s2283_s1 + $0xf0] sm:$0xff]  ;;  %v102_v8 = vld [vmem:[%s2283_s1 + $0xe8] sm:$0xff] }
   0x2   :  { %v136_v1 = vld [vmem:[%s2283_s1 + $0x1f8] sm:$0xff]  ;;  %1000 = vmatprep.subr.mxu0 %v104_v0  ;;  %v135_v5 = vld [vmem:[%s2283_s1 + $0x1f0] sm:$0xff]  ;;  %v134_v9 = vld [vmem:[%s2283_s1 + $0x1e8] sm:$0xff] }
   0x3   :  { %v88_v2 = vld [vmem:[%s2283_s1 + $0x78] sm:$0xff]  ;;  %1041 = vmatprep.subr.mxu1 %v136_v1  ;;  %v87_v6 = vld [vmem:[%s2283_s1 + $0x70] sm:$0xff]  ;;  %v86_v10 = vld [vmem:[%s2283_s1 + $0x68] sm:$0xff] }
   0x4   :  { %v120_v3 = vld [vmem:[%s2283_s1 + $0x178] sm:$0xff]  ;;  %1001 = vmatpush3.msra.mxu0 %v88_v2  ;;  %v119_v7 = vld [vmem:[%s2283_s1 + $0x170] sm:$0xff]  ;;  %v118_v11 = vld [vmem:[%s2283_s1 + $0x168] sm:$0xff] }
   0x5   :  { %1042 = vmatpush3.msra.mxu1 %v120_v3  ;;  %1002 = vmatprep.subr.mxu0 %v103_v4  ;;  %v101_v12 = vld [vmem:[%s2283_s1 + $0xe0] sm:$0xff]  ;;  %v100_v16 = vld [vmem:[%s2283_s1 + $0xd8] sm:$0xff]  ;;  %v99_v20 = vld [vmem:[%s2283_s1 + $0xd0] sm:$0xff] }
   0x6   :  { %1043 = vmatprep.subr.mxu1 %v135_v5  ;;  %1003 = vmatpush3.msra.mxu0 %v87_v6  ;;  %v133_v13 = vld [vmem:[%s2283_s1 + $0x1e0] sm:$0xff]  ;;  %v132_v17 = vld [vmem:[%s2283_s1 + $0x1d8] sm:$0xff]  ;;  %v131_v21 = vld [vmem:[%s2283_s1 + $0x1d0] sm:$0xff] }
   0x7   :  { %1044 = vmatpush3.msra.mxu1 %v119_v7  ;;  %1004 = vmatprep.subr.mxu0 %v102_v8  ;;  %v85_v14 = vld [vmem:[%s2283_s1 + $0x60] sm:$0xff]  ;;  %v84_v18 = vld [vmem:[%s2283_s1 + $0x58] sm:$0xff]  ;;  %v83_v22 = vld [vmem:[%s2283_s1 + $0x50] sm:$0xff] }
   0x8   :  { %1045 = vmatprep.subr.mxu1 %v134_v9  ;;  %v117_v15 = vld [vmem:[%s2283_s1 + $0x160] sm:$0xff]  ;;  %1005 = vmatpush3.msra.mxu0 %v86_v10  ;;  %v116_v19 = vld [vmem:[%s2283_s1 + $0x158] sm:$0xff]  ;;  %v115_v23 = vld [vmem:[%s2283_s1 + $0x150] sm:$0xff] }
   0x9   :  { %1046 = vmatpush3.msra.mxu1 %v118_v11  ;;  %1006 = vmatprep.subr.mxu0 %v101_v12  ;;  %v98_v24 = vld [vmem:[%s2283_s1 + $0xc8] sm:$0xff]  ;;  %v97_v28 = vld [vmem:[%s2283_s1 + $0xc0] sm:$0xff]  ;;  %v96_v32 = vld [vmem:[%s2283_s1 + $0xb8] sm:$0xff] }
   0xa   :  { %1047 = vmatprep.subr.mxu1 %v133_v13  ;;  %1007 = vmatpush3.msra.mxu0 %v85_v14  ;;  %v130_v25 = vld [vmem:[%s2283_s1 + $0x1c8] sm:$0xff]  ;;  %v129_v29 = vld [vmem:[%s2283_s1 + $0x1c0] sm:$0xff]  ;;  %v128_v33 = vld [vmem:[%s2283_s1 + $0x1b8] sm:$0xff] }
   0xb   :  { %1048 = vmatpush3.msra.mxu1 %v117_v15  ;;  %1008 = vmatprep.subr.mxu0 %v100_v16  ;;  %v82_v26 = vld [vmem:[%s2283_s1 + $0x48] sm:$0xff]  ;;  %v81_v30 = vld [vmem:[%s2283_s1 + $0x40] sm:$0xff]  ;;  %v80_v34 = vld [vmem:[%s2283_s1 + $0x38] sm:$0xff] }
   0xc   :  { %1049 = vmatprep.subr.mxu1 %v132_v17  ;;  %1009 = vmatpush3.msra.mxu0 %v84_v18  ;;  %v114_v27 = vld [vmem:[%s2283_s1 + $0x148] sm:$0xff]  ;;  %v113_v31 = vld [vmem:[%s2283_s1 + $0x140] sm:$0xff]  ;;  %v112_v35 = vld [vmem:[%s2283_s1 + $0x138] sm:$0xff] }
   0xd   :  { %1050 = vmatpush3.msra.mxu1 %v116_v19  ;;  %1010 = vmatprep.subr.mxu0 %v99_v20  ;;  %v95_v36 = vld [vmem:[%s2283_s1 + $0xb0] sm:$0xff]  ;;  %v94_v40 = vld [vmem:[%s2283_s1 + $0xa8] sm:$0xff]  ;;  %v93_v44 = vld [vmem:[%s2283_s1 + $0xa0] sm:$0xff] }
   0xe   :  { %1051 = vmatprep.subr.mxu1 %v131_v21  ;;  %1011 = vmatpush3.msra.mxu0 %v83_v22  ;;  %v127_v37 = vld [vmem:[%s2283_s1 + $0x1b0] sm:$0xff]  ;;  %v126_v41 = vld [vmem:[%s2283_s1 + $0x1a8] sm:$0xff]  ;;  %v125_v45 = vld [vmem:[%s2283_s1 + $0x1a0] sm:$0xff] }
   0xf   :  { %1052 = vmatpush3.msra.mxu1 %v115_v23  ;;  %1012 = vmatprep.subr.mxu0 %v98_v24  ;;  %v79_v38 = vld [vmem:[%s2283_s1 + $0x30] sm:$0xff]  ;;  %v78_v42 = vld [vmem:[%s2283_s1 + $0x28] sm:$0xff]  ;;  %v77_v46 = vld [vmem:[%s2283_s1 + $0x20] sm:$0xff] }
  0x10   :  { %1053 = vmatprep.subr.mxu1 %v130_v25  ;;  %1013 = vmatpush3.msra.mxu0 %v82_v26  ;;  %v111_v39 = vld [vmem:[%s2283_s1 + $0x130] sm:$0xff]  ;;  %v110_v43 = vld [vmem:[%s2283_s1 + $0x128] sm:$0xff]  ;;  %v109_v47 = vld [vmem:[%s2283_s1 + $0x120] sm:$0xff] }
  0x11   :  { %1054 = vmatpush3.msra.mxu1 %v114_v27  ;;  %1014 = vmatprep.subr.mxu0 %v97_v28  ;;  %v92_v48 = vld [vmem:[%s2283_s1 + $0x98] sm:$0xff]  ;;  %v91_v52 = vld [vmem:[%s2283_s1 + $0x90] sm:$0xff]  ;;  %v90_v56 = vld [vmem:[%s2283_s1 + $0x88] sm:$0xff] }
  0x12   :  { %1055 = vmatprep.subr.mxu1 %v129_v29  ;;  %1015 = vmatpush3.msra.mxu0 %v81_v30  ;;  %v124_v49 = vld [vmem:[%s2283_s1 + $0x198] sm:$0xff]  ;;  %v123_v53 = vld [vmem:[%s2283_s1 + $0x190] sm:$0xff]  ;;  %v122_v57 = vld [vmem:[%s2283_s1 + $0x188] sm:$0xff] }
  0x13   :  { %1056 = vmatpush3.msra.mxu1 %v113_v31  ;;  %1016 = vmatprep.subr.mxu0 %v96_v32  ;;  %v76_v50 = vld [vmem:[%s2283_s1 + $0x18] sm:$0xff]  ;;  %v75_v54 = vld [vmem:[%s2283_s1 + $0x10] sm:$0xff]  ;;  %v74_v58 = vld [vmem:[%s2283_s1 + $0x8] sm:$0xff] }
  0x14   :  { %1057 = vmatprep.subr.mxu1 %v128_v33  ;;  %1017 = vmatpush3.msra.mxu0 %v80_v34  ;;  %v108_v51 = vld [vmem:[%s2283_s1 + $0x118] sm:$0xff]  ;;  %v107_v55 = vld [vmem:[%s2283_s1 + $0x110] sm:$0xff]  ;;  %v106_v59 = vld [vmem:[%s2283_s1 + $0x108] sm:$0xff] }
  0x15   :  { %1058 = vmatpush3.msra.mxu1 %v112_v35  ;;  %1018 = vmatprep.subr.mxu0 %v95_v36  ;;  %v89_v60 = vld [vmem:[%s2283_s1 + $0x80] sm:$0xff]  ;;  %v26_v63 = vld [vmem:[%s2284_s0 + $0x8] sm:$0xff]  ;;  %v28_v1 = vld [vmem:[%s2284_s0 + $0x18] sm:$0xff] }
  0x16   :  { %1059 = vmatprep.subr.mxu1 %v127_v37  ;;  %1019 = vmatpush3.msra.mxu0 %v79_v38  ;;  %v121_v61 = vld [vmem:[%s2283_s1 + $0x180] sm:$0xff]  ;;  %v27_v3 = vld [vmem:[%s2284_s0 + $0x10] sm:$0xff]  ;;  %v168_v4 = vld [vmem:[%s2283_s1 + $0x2f8] sm:$0xff] }
  0x17   :  { %1060 = vmatpush3.msra.mxu1 %v111_v39  ;;  %1020 = vmatprep.subr.mxu0 %v94_v40  ;;  %v73_v62 = vld [vmem:[%s2283_s1] sm:$0xff]  ;;  %v200_v5 = vld [vmem:[%s2283_s1 + $0x3f8] sm:$0xff]  ;;  %v167_v8 = vld [vmem:[%s2283_s1 + $0x2f0] sm:$0xff] }
  0x18   :  { %1061 = vmatprep.subr.mxu1 %v126_v41  ;;  %1021 = vmatpush3.msra.mxu0 %v78_v42  ;;  %v105_v0 = vld [vmem:[%s2283_s1 + $0x100] sm:$0xff]  ;;  %v152_v6 = vld [vmem:[%s2283_s1 + $0x278] sm:$0xff]  ;;  %v199_v9 = vld [vmem:[%s2283_s1 + $0x3f0] sm:$0xff] }
  0x19   :  { %1062 = vmatpush3.msra.mxu1 %v110_v43  ;;  %1022 = vmatprep.subr.mxu0 %v93_v44  ;;  %v25_v2 = vld [vmem:[%s2284_s0] sm:$0xff]  ;;  %v184_v7 = vld [vmem:[%s2283_s1 + $0x378] sm:$0xff]  ;;  %v151_v10 = vld [vmem:[%s2283_s1 + $0x270] sm:$0xff] }
  0x1a   :  { %1063 = vmatprep.subr.mxu1 %v125_v45  ;;  %1023 = vmatpush3.msra.mxu0 %v77_v46  ;;  %v183_v11 = vld [vmem:[%s2283_s1 + $0x370] sm:$0xff]  ;;  %v166_v12 = vld [vmem:[%s2283_s1 + $0x2e8] sm:$0xff]  ;;  %v165_v16 = vld [vmem:[%s2283_s1 + $0x2e0] sm:$0xff] }
  0x1b   :  { %1064 = vmatpush3.msra.mxu1 %v109_v47  ;;  %1024 = vmatprep.subr.mxu0 %v92_v48  ;;  %v198_v13 = vld [vmem:[%s2283_s1 + $0x3e8] sm:$0xff]  ;;  %v197_v17 = vld [vmem:[%s2283_s1 + $0x3e0] sm:$0xff]  ;;  %v164_v20 = vld [vmem:[%s2283_s1 + $0x2d8] sm:$0xff] }
  0x1c   :  { %1065 = vmatprep.subr.mxu1 %v124_v49  ;;  %1025 = vmatpush3.msra.mxu0 %v76_v50  ;;  %v150_v14 = vld [vmem:[%s2283_s1 + $0x268] sm:$0xff]  ;;  %v149_v18 = vld [vmem:[%s2283_s1 + $0x260] sm:$0xff]  ;;  %v196_v21 = vld [vmem:[%s2283_s1 + $0x3d8] sm:$0xff] }
  0x1d   :  { %1066 = vmatpush3.msra.mxu1 %v108_v51  ;;  %1026 = vmatprep.subr.mxu0 %v91_v52  ;;  %v182_v15 = vld [vmem:[%s2283_s1 + $0x368] sm:$0xff]  ;;  %v181_v19 = vld [vmem:[%s2283_s1 + $0x360] sm:$0xff]  ;;  %v148_v22 = vld [vmem:[%s2283_s1 + $0x258] sm:$0xff] }
  0x1e   :  { %1067 = vmatprep.subr.mxu1 %v123_v53  ;;  %1027 = vmatpush3.msra.mxu0 %v75_v54  ;;  %v180_v23 = vld [vmem:[%s2283_s1 + $0x358] sm:$0xff]  ;;  %v163_v24 = vld [vmem:[%s2283_s1 + $0x2d0] sm:$0xff]  ;;  %v162_v28 = vld [vmem:[%s2283_s1 + $0x2c8] sm:$0xff] }
  0x1f   :  { %1068 = vmatpush3.msra.mxu1 %v107_v55  ;;  %1028 = vmatprep.subr.mxu0 %v90_v56  ;;  %v195_v25 = vld [vmem:[%s2283_s1 + $0x3d0] sm:$0xff]  ;;  %v194_v29 = vld [vmem:[%s2283_s1 + $0x3c8] sm:$0xff]  ;;  %v161_v32 = vld [vmem:[%s2283_s1 + $0x2c0] sm:$0xff] }
  0x20   :  { %1069 = vmatprep.subr.mxu1 %v122_v57  ;;  %1029 = vmatpush3.msra.mxu0 %v74_v58  ;;  %v147_v26 = vld [vmem:[%s2283_s1 + $0x250] sm:$0xff]  ;;  %v146_v30 = vld [vmem:[%s2283_s1 + $0x248] sm:$0xff]  ;;  %v193_v33 = vld [vmem:[%s2283_s1 + $0x3c0] sm:$0xff] }
  0x21   :  { %1070 = vmatpush3.msra.mxu1 %v106_v59  ;;  %1030 = vmatprep.subr.mxu0 %v89_v60  ;;  %v179_v27 = vld [vmem:[%s2283_s1 + $0x350] sm:$0xff]  ;;  %v178_v31 = vld [vmem:[%s2283_s1 + $0x348] sm:$0xff]  ;;  %v145_v34 = vld [vmem:[%s2283_s1 + $0x240] sm:$0xff] }
  0x22   :  { %1071 = vmatprep.subr.mxu1 %v121_v61  ;;  %1031 = vmatpush3.msra.mxu0 %v73_v62  ;;  %v177_v35 = vld [vmem:[%s2283_s1 + $0x340] sm:$0xff]  ;;  %v160_v36 = vld [vmem:[%s2283_s1 + $0x2b8] sm:$0xff]  ;;  %v159_v40 = vld [vmem:[%s2283_s1 + $0x2b0] sm:$0xff] }
  0x23   :  { %393 = vmatprep.mubr.f32.mxu0 %v26_v63  ;;  %1072 = vmatpush3.msra.mxu1 %v105_v0  ;;  %v192_v37 = vld [vmem:[%s2283_s1 + $0x3b8] sm:$0xff]  ;;  %v191_v41 = vld [vmem:[%s2283_s1 + $0x3b0] sm:$0xff]  ;;  %v158_v44 = vld [vmem:[%s2283_s1 + $0x2a8] sm:$0xff] }
  0x24   :  { %473 = vmatprep.mubr.f32.mxu1 %v28_v1  ;;  %394 = vmatmul.mubr.f32.vlgmr.msra.gmra.mxu0 %v25_v2  ;;  %v144_v38 = vld [vmem:[%s2283_s1 + $0x238] sm:$0xff]  ;;  %v143_v42 = vld [vmem:[%s2283_s1 + $0x230] sm:$0xff]  ;;  %v190_v45 = vld [vmem:[%s2283_s1 + $0x3a8] sm:$0xff] }
  0x25   :  { %474 = vmatmul.mubr.f32.vlgmr.msra.gmra.mxu1 %v27_v3  ;;  %1082 = vmatprep.subr.mxu0 %v168_v4  ;;  %v176_v39 = vld [vmem:[%s2283_s1 + $0x338] sm:$0xff]  ;;  %v175_v43 = vld [vmem:[%s2283_s1 + $0x330] sm:$0xff]  ;;  %v142_v46 = vld [vmem:[%s2283_s1 + $0x228] sm:$0xff] }
  0x26   :  { %1123 = vmatprep.subr.mxu1 %v200_v5  ;;  %1083 = vmatpush3.msra.mxu0 %v152_v6  ;;  %v174_v47 = vld [vmem:[%s2283_s1 + $0x328] sm:$0xff]  ;;  %v44_v49 = vld [vmem:[%s2284_s0 + $0x98] sm:$0xff]  ;;  %v157_v50 = vld [vmem:[%s2283_s1 + $0x2a0] sm:$0xff] }
  0x27   :  { %1124 = vmatpush3.msra.mxu1 %v184_v7  ;;  %1084 = vmatprep.subr.mxu0 %v167_v8  ;;  %v42_v48 = vld [vmem:[%s2284_s0 + $0x88] sm:$0xff]  ;;  %v189_v51 = vld [vmem:[%s2283_s1 + $0x3a0] sm:$0xff]  ;;  %v43_v53 = vld [vmem:[%s2284_s0 + $0x90] sm:$0xff] }
  0x28   :  { %1125 = vmatprep.subr.mxu1 %v199_v9  ;;  %1085 = vmatpush3.msra.mxu0 %v151_v10  ;;  %v41_v52 = vld [vmem:[%s2284_s0 + $0x80] sm:$0xff]  ;;  %v156_v56 = vld [vmem:[%s2283_s1 + $0x298] sm:$0xff]  ;;  %v58_v60 = vld [vmem:[%s2284_s0 + $0x108] sm:$0xff] }
  0x29   :  { %1126 = vmatpush3.msra.mxu1 %v183_v11  ;;  %1086 = vmatprep.subr.mxu0 %v166_v12  ;;  %v141_v54 = vld [vmem:[%s2283_s1 + $0x220] sm:$0xff]  ;;  %v188_v57 = vld [vmem:[%s2283_s1 + $0x398] sm:$0xff]  ;;  %v155_v62 = vld [vmem:[%s2283_s1 + $0x290] sm:$0xff] }
  0x2a   :  { %1127 = vmatprep.subr.mxu1 %v198_v13  ;;  %1087 = vmatpush3.msra.mxu0 %v150_v14  ;;  %v173_v55 = vld [vmem:[%s2283_s1 + $0x320] sm:$0xff]  ;;  %v140_v58 = vld [vmem:[%s2283_s1 + $0x218] sm:$0xff]  ;;  %v187_v63 = vld [vmem:[%s2283_s1 + $0x390] sm:$0xff] }
  0x2b   :  { %1128 = vmatpush3.msra.mxu1 %v182_v15  ;;  %1088 = vmatprep.subr.mxu0 %v165_v16  ;;  %v172_v59 = vld [vmem:[%s2283_s1 + $0x318] sm:$0xff]  ;;  %v57_v0 = vld [vmem:[%s2284_s0 + $0x100] sm:$0xff]  ;;  %v59_v1 = vld [vmem:[%s2284_s0 + $0x110] sm:$0xff] }
  0x2c   :  { %1129 = vmatprep.subr.mxu1 %v197_v17  ;;  %1089 = vmatpush3.msra.mxu0 %v149_v18  ;;  %v60_v61 = vld [vmem:[%s2284_s0 + $0x118] sm:$0xff]  ;;  %v139_v2 = vld [vmem:[%s2283_s1 + $0x210] sm:$0xff]  ;;  %v154_v4 = vld [vmem:[%s2283_s1 + $0x288] sm:$0xff] }
  0x2d   :  { %1130 = vmatpush3.msra.mxu1 %v181_v19  ;;  %1090 = vmatprep.subr.mxu0 %v164_v20  ;;  %v171_v3 = vld [vmem:[%s2283_s1 + $0x310] sm:$0xff]  ;;  %v186_v5 = vld [vmem:[%s2283_s1 + $0x388] sm:$0xff]  ;;  %v153_v8 = vld [vmem:[%s2283_s1 + $0x280] sm:$0xff] }
  0x2e   :  { %1131 = vmatprep.subr.mxu1 %v196_v21  ;;  %1091 = vmatpush3.msra.mxu0 %v148_v22  ;;  %v138_v6 = vld [vmem:[%s2283_s1 + $0x208] sm:$0xff]  ;;  %v185_v9 = vld [vmem:[%s2283_s1 + $0x380] sm:$0xff]  ;;  %v32_v14 = vld [vmem:[%s2284_s0 + $0x38] sm:$0xff] }
  0x2f   :  { %1132 = vmatpush3.msra.mxu1 %v180_v23  ;;  %1092 = vmatprep.subr.mxu0 %v163_v24  ;;  %v170_v7 = vld [vmem:[%s2283_s1 + $0x308] sm:$0xff]  ;;  %v137_v10 = vld [vmem:[%s2283_s1 + $0x200] sm:$0xff]  ;;  %v232_v15 = vld [vmem:[%s2283_s1 + $0x4f8] sm:$0xff] }
  0x30   :  { %1133 = vmatprep.subr.mxu1 %v195_v25  ;;  %1093 = vmatpush3.msra.mxu0 %v147_v26  ;;  %v30_v11 = vld [vmem:[%s2284_s0 + $0x28] sm:$0xff]  ;;  %v169_v12 = vld [vmem:[%s2283_s1 + $0x300] sm:$0xff]  ;;  %v264_v16 = vld [vmem:[%s2283_s1 + $0x5f8] sm:$0xff] }
  0x31   :  { %1134 = vmatpush3.msra.mxu1 %v179_v27  ;;  %1094 = vmatprep.subr.mxu0 %v162_v28  ;;  %v29_v13 = vld [vmem:[%s2284_s0 + $0x20] sm:$0xff]  ;;  %v31_v17 = vld [vmem:[%s2284_s0 + $0x30] sm:$0xff]  ;;  %v216_v18 = vld [vmem:[%s2283_s1 + $0x478] sm:$0xff] }
  0x32   :  { %1135 = vmatprep.subr.mxu1 %v194_v29  ;;  %1095 = vmatpush3.msra.mxu0 %v146_v30  ;;  %v248_v19 = vld [vmem:[%s2283_s1 + $0x578] sm:$0xff]  ;;  %v231_v20 = vld [vmem:[%s2283_s1 + $0x4f0] sm:$0xff]  ;;  %v46_v22 = vld [vmem:[%s2284_s0 + $0xa8] sm:$0xff] }
  0x33   :  { %1136 = vmatpush3.msra.mxu1 %v178_v31  ;;  %1096 = vmatprep.subr.mxu0 %v161_v32  ;;  %v263_v21 = vld [vmem:[%s2283_s1 + $0x5f0] sm:$0xff]  ;;  %v45_v25 = vld [vmem:[%s2284_s0 + $0xa0] sm:$0xff]  ;;  %v230_v26 = vld [vmem:[%s2283_s1 + $0x4e8] sm:$0xff] }
  0x34   :  { %1137 = vmatprep.subr.mxu1 %v193_v33  ;;  %1097 = vmatpush3.msra.mxu0 %v145_v34  ;;  %v215_v23 = vld [vmem:[%s2283_s1 + $0x470] sm:$0xff]  ;;  %v262_v27 = vld [vmem:[%s2283_s1 + $0x5e8] sm:$0xff]  ;;  %v48_v28 = vld [vmem:[%s2284_s0 + $0xb8] sm:$0xff] }
  0x35   :  { %1138 = vmatpush3.msra.mxu1 %v177_v35  ;;  %1098 = vmatprep.subr.mxu0 %v160_v36  ;;  %v247_v24 = vld [vmem:[%s2283_s1 + $0x570] sm:$0xff]  ;;  %v214_v29 = vld [vmem:[%s2283_s1 + $0x468] sm:$0xff]  ;;  %v229_v31 = vld [vmem:[%s2283_s1 + $0x4e0] sm:$0xff] }
  0x36   :  { %1139 = vmatprep.subr.mxu1 %v192_v37  ;;  %1099 = vmatpush3.msra.mxu0 %v144_v38  ;;  %v246_v30 = vld [vmem:[%s2283_s1 + $0x568] sm:$0xff]  ;;  %v47_v32 = vld [vmem:[%s2284_s0 + $0xb0] sm:$0xff]  ;;  %v261_v33 = vld [vmem:[%s2283_s1 + $0x5e0] sm:$0xff] }
  0x37   :  { %1140 = vmatpush3.msra.mxu1 %v176_v39  ;;  %1100 = vmatprep.subr.mxu0 %v159_v40  ;;  %v62_v34 = vld [vmem:[%s2284_s0 + $0x128] sm:$0xff]  ;;  %v213_v35 = vld [vmem:[%s2283_s1 + $0x460] sm:$0xff]  ;;  %v228_v38 = vld [vmem:[%s2283_s1 + $0x4d8] sm:$0xff] }
  0x38   :  { %1141 = vmatprep.subr.mxu1 %v191_v41  ;;  %1101 = vmatpush3.msra.mxu0 %v143_v42  ;;  %v245_v36 = vld [vmem:[%s2283_s1 + $0x560] sm:$0xff]  ;;  %v260_v39 = vld [vmem:[%s2283_s1 + $0x5d8] sm:$0xff] }
  0x39   :  { %1142 = vmatpush3.msra.mxu1 %v175_v43  ;;  %1102 = vmatprep.subr.mxu0 %v158_v44  ;;  %v61_v37 = vld [vmem:[%s2284_s0 + $0x120] sm:$0xff]  ;;  %v64_v40 = vld [vmem:[%s2284_s0 + $0x138] sm:$0xff]  ;;  %v227_v43 = vld [vmem:[%s2283_s1 + $0x4d0] sm:$0xff] }
  0x3a   :  { %1143 = vmatprep.subr.mxu1 %v190_v45  ;;  %1103 = vmatpush3.msra.mxu0 %v142_v46  ;;  %v212_v41 = vld [vmem:[%s2283_s1 + $0x458] sm:$0xff]  ;;  %v63_v44 = vld [vmem:[%s2284_s0 + $0x130] sm:$0xff] }
  0x3b   :  { %1144 = vmatpush3.msra.mxu1 %v174_v47  ;;  %398 = vmatprep.mubr.f32.mxu0 %v42_v48  ;;  %v244_v42 = vld [vmem:[%s2283_s1 + $0x558] sm:$0xff]  ;;  %v259_v45 = vld [vmem:[%s2283_s1 + $0x5d0] sm:$0xff]  ;;  %v226_v48 = vld [vmem:[%s2283_s1 + $0x4c8] sm:$0xff] }
  0x3c   :  { %478 = vmatprep.mubr.f32.mxu1 %v44_v49  ;;  %1104 = vmatprep.subr.mxu0 %v157_v50  ;;  %v211_v46 = vld [vmem:[%s2283_s1 + $0x450] sm:$0xff]  ;;  %v258_v49 = vld [vmem:[%s2283_s1 + $0x5c8] sm:$0xff] }
  0x3d   :  { %1145 = vmatprep.subr.mxu1 %v189_v51  ;;  %399 = vmatmul.mubr.f32.gmra.mxu0 %v41_v52  ;;  %v243_v47 = vld [vmem:[%s2283_s1 + $0x550] sm:$0xff]  ;;  %v210_v50 = vld [vmem:[%s2283_s1 + $0x448] sm:$0xff]  ;;  %v225_v52 = vld [vmem:[%s2283_s1 + $0x4c0] sm:$0xff] }
  0x3e   :  { %479 = vmatmul.mubr.f32.gmra.mxu1 %v43_v53  ;;  %1105 = vmatpush3.msra.mxu0 %v141_v54  ;;  %v242_v51 = vld [vmem:[%s2283_s1 + $0x548] sm:$0xff]  ;;  %v257_v53 = vld [vmem:[%s2283_s1 + $0x5c0] sm:$0xff] }
  0x3f   :  { %1146 = vmatpush3.msra.mxu1 %v173_v55  ;;  %1106 = vmatprep.subr.mxu0 %v156_v56  ;;  %v209_v54 = vld [vmem:[%s2283_s1 + $0x440] sm:$0xff]  ;;  %v224_v56 = vld [vmem:[%s2283_s1 + $0x4b8] sm:$0xff] }
  0x40   :  { %1147 = vmatprep.subr.mxu1 %v188_v57  ;;  %1107 = vmatpush3.msra.mxu0 %v140_v58  ;;  %v241_v55 = vld [vmem:[%s2283_s1 + $0x540] sm:$0xff]  ;;  %v256_v57 = vld [vmem:[%s2283_s1 + $0x5b8] sm:$0xff] }
  0x41   :  { %1148 = vmatpush3.msra.mxu1 %v172_v59  ;;  %403 = vmatprep.mubr.f32.mxu0 %v58_v60  ;;  %v208_v58 = vld [vmem:[%s2283_s1 + $0x438] sm:$0xff]  ;;  %v223_v60 = vld [vmem:[%s2283_s1 + $0x4b0] sm:$0xff] }
  0x42   :  { %483 = vmatprep.mubr.f32.mxu1 %v60_v61  ;;  %1108 = vmatprep.subr.mxu0 %v155_v62  ;;  %v240_v59 = vld [vmem:[%s2283_s1 + $0x538] sm:$0xff]  ;;  %v255_v61 = vld [vmem:[%s2283_s1 + $0x5b0] sm:$0xff] }
  0x43   :  { %1149 = vmatprep.subr.mxu1 %v187_v63  ;;  %404 = vmatmul.mubr.f32.gmra.mxu0 %v57_v0  ;;  %v207_v62 = vld [vmem:[%s2283_s1 + $0x430] sm:$0xff]  ;;  %v222_v0 = vld [vmem:[%s2283_s1 + $0x4a8] sm:$0xff] }
  0x44   :  { %484 = vmatmul.mubr.f32.gmra.mxu1 %v59_v1  ;;  %1109 = vmatpush3.msra.mxu0 %v139_v2  ;;  %v239_v63 = vld [vmem:[%s2283_s1 + $0x530] sm:$0xff]  ;;  %v254_v1 = vld [vmem:[%s2283_s1 + $0x5a8] sm:$0xff] }
  0x45   :  { %1150 = vmatpush3.msra.mxu1 %v171_v3  ;;  %1110 = vmatprep.subr.mxu0 %v154_v4  ;;  %v206_v2 = vld [vmem:[%s2283_s1 + $0x428] sm:$0xff]  ;;  %v221_v4 = vld [vmem:[%s2283_s1 + $0x4a0] sm:$0xff] }
  0x46   :  { %1151 = vmatprep.subr.mxu1 %v186_v5  ;;  %1111 = vmatpush3.msra.mxu0 %v138_v6  ;;  %v238_v3 = vld [vmem:[%s2283_s1 + $0x528] sm:$0xff]  ;;  %v253_v5 = vld [vmem:[%s2283_s1 + $0x5a0] sm:$0xff] }
  0x47   :  { %1152 = vmatpush3.msra.mxu1 %v170_v7  ;;  %1112 = vmatprep.subr.mxu0 %v153_v8  ;;  %v205_v6 = vld [vmem:[%s2283_s1 + $0x420] sm:$0xff]  ;;  %v220_v8 = vld [vmem:[%s2283_s1 + $0x498] sm:$0xff] }
  0x48   :  { %1153 = vmatprep.subr.mxu1 %v185_v9  ;;  %1113 = vmatpush3.msra.mxu0 %v137_v10  ;;  %v237_v7 = vld [vmem:[%s2283_s1 + $0x520] sm:$0xff]  ;;  %v252_v9 = vld [vmem:[%s2283_s1 + $0x598] sm:$0xff] }
  0x49   :  { %553 = vmatprep.mubr.f32.mxu0 %v30_v11  ;;  %1154 = vmatpush3.msra.mxu1 %v169_v12  ;;  %v204_v10 = vld [vmem:[%s2283_s1 + $0x418] sm:$0xff]  ;;  %v219_v12 = vld [vmem:[%s2283_s1 + $0x490] sm:$0xff] }
  0x4a   :  { %554 = vmatmul.mubr.f32.vlgmr.msra.gmra.mxu0 %v29_v13  ;;  %633 = vmatprep.mubr.f32.mxu1 %v32_v14  ;;  %v236_v11 = vld [vmem:[%s2283_s1 + $0x518] sm:$0xff]  ;;  %v251_v13 = vld [vmem:[%s2283_s1 + $0x590] sm:$0xff] }
  0x4b   :  { %1164 = vmatprep.subr.mxu0 %v232_v15  ;;  %1205 = vmatprep.subr.mxu1 %v264_v16  ;;  %v203_v14 = vld [vmem:[%s2283_s1 + $0x410] sm:$0xff]  ;;  %v218_v16 = vld [vmem:[%s2283_s1 + $0x488] sm:$0xff] }
  0x4c   :  { %634 = vmatmul.mubr.f32.vlgmr.msra.gmra.mxu1 %v31_v17  ;;  %1165 = vmatpush3.msra.mxu0 %v216_v18  ;;  %v235_v15 = vld [vmem:[%s2283_s1 + $0x510] sm:$0xff]  ;;  %v250_v17 = vld [vmem:[%s2283_s1 + $0x588] sm:$0xff] }
  0x4d   :  { %1206 = vmatpush3.msra.mxu1 %v248_v19  ;;  %1166 = vmatprep.subr.mxu0 %v231_v20  ;;  %v202_v18 = vld [vmem:[%s2283_s1 + $0x408] sm:$0xff]  ;;  %v217_v20 = vld [vmem:[%s2283_s1 + $0x480] sm:$0xff] }
  0x4e   :  { %1207 = vmatprep.subr.mxu1 %v263_v21  ;;  %558 = vmatprep.mubr.f32.mxu0 %v46_v22  ;;  %v234_v19 = vld [vmem:[%s2283_s1 + $0x508] sm:$0xff]  ;;  %v249_v21 = vld [vmem:[%s2283_s1 + $0x580] sm:$0xff] }
  0x4f   :  { %1167 = vmatpush3.msra.mxu0 %v215_v23  ;;  %1208 = vmatpush3.msra.mxu1 %v247_v24  ;;  %v201_v22 = vld [vmem:[%s2283_s1 + $0x400] sm:$0xff]  ;;  %v34_v23 = vld [vmem:[%s2284_s0 + $0x48] sm:$0xff] }
  0x50   :  { %559 = vmatmul.mubr.f32.gmra.mxu0 %v45_v25  ;;  %1168 = vmatprep.subr.mxu0 %v230_v26  ;;  %v233_v24 = vld [vmem:[%s2283_s1 + $0x500] sm:$0xff]  ;;  %v36_v26 = vld [vmem:[%s2284_s0 + $0x58] sm:$0xff] }
  0x51   :  { %1209 = vmatprep.subr.mxu1 %v262_v27  ;;  %638 = vmatprep.mubr.f32.mxu1 %v48_v28  ;;  %v33_v25 = vld [vmem:[%s2284_s0 + $0x40] sm:$0xff]  ;;  %v296_v27 = vld [vmem:[%s2283_s1 + $0x6f8] sm:$0xff] }
  0x52   :  { %1169 = vmatpush3.msra.mxu0 %v214_v29  ;;  %1210 = vmatpush3.msra.mxu1 %v246_v30  ;;  %v328_v28 = vld [vmem:[%s2283_s1 + $0x7f8] sm:$0xff]  ;;  %v35_v29 = vld [vmem:[%s2284_s0 + $0x50] sm:$0xff] }
  0x53   :  { %1170 = vmatprep.subr.mxu0 %v229_v31  ;;  %639 = vmatmul.mubr.f32.gmra.mxu1 %v47_v32  ;;  %v280_v30 = vld [vmem:[%s2283_s1 + $0x678] sm:$0xff]  ;;  %v295_v32 = vld [vmem:[%s2283_s1 + $0x6f0] sm:$0xff] }
  0x54   :  { %1211 = vmatprep.subr.mxu1 %v261_v33  ;;  %563 = vmatprep.mubr.f32.mxu0 %v62_v34  ;;  %v312_v31 = vld [vmem:[%s2283_s1 + $0x778] sm:$0xff]  ;;  %v327_v33 = vld [vmem:[%s2283_s1 + $0x7f0] sm:$0xff]  ;;  %v50_v34 = vld [vmem:[%s2284_s0 + $0xc8] sm:$0xff] }
  0x55   :  { %1171 = vmatpush3.msra.mxu0 %v213_v35  ;;  %1212 = vmatpush3.msra.mxu1 %v245_v36  ;;  %v279_v35 = vld [vmem:[%s2283_s1 + $0x670] sm:$0xff] }
  0x56   :  { %564 = vmatmul.mubr.f32.gmra.mxu0 %v61_v37  ;;  %1172 = vmatprep.subr.mxu0 %v228_v38  ;;  %v311_v36 = vld [vmem:[%s2283_s1 + $0x770] sm:$0xff]  ;;  %v49_v37 = vld [vmem:[%s2284_s0 + $0xc0] sm:$0xff]  ;;  %v294_v38 = vld [vmem:[%s2283_s1 + $0x6e8] sm:$0xff] }
  0x57   :  { %1213 = vmatprep.subr.mxu1 %v260_v39  ;;  %643 = vmatprep.mubr.f32.mxu1 %v64_v40  ;;  %v326_v39 = vld [vmem:[%s2283_s1 + $0x7e8] sm:$0xff]  ;;  %v52_v40 = vld [vmem:[%s2284_s0 + $0xd8] sm:$0xff] }
  0x58   :  { %1173 = vmatpush3.msra.mxu0 %v212_v41  ;;  %1214 = vmatpush3.msra.mxu1 %v244_v42  ;;  %v278_v41 = vld [vmem:[%s2283_s1 + $0x668] sm:$0xff] }
  0x59   :  { %1174 = vmatprep.subr.mxu0 %v227_v43  ;;  %644 = vmatmul.mubr.f32.gmra.mxu1 %v63_v44  ;;  %v310_v42 = vld [vmem:[%s2283_s1 + $0x768] sm:$0xff]  ;;  %v293_v43 = vld [vmem:[%s2283_s1 + $0x6e0] sm:$0xff]  ;;  %v51_v44 = vld [vmem:[%s2284_s0 + $0xd0] sm:$0xff] }
  0x5a   :  { %1215 = vmatprep.subr.mxu1 %v259_v45  ;;  %1175 = vmatpush3.msra.mxu0 %v211_v46  ;;  %v325_v45 = vld [vmem:[%s2283_s1 + $0x7e0] sm:$0xff]  ;;  %v66_v46 = vld [vmem:[%s2284_s0 + $0x148] sm:$0xff] }
  0x5b   :  { %1216 = vmatpush3.msra.mxu1 %v243_v47  ;;  %1176 = vmatprep.subr.mxu0 %v226_v48  ;;  %v277_v47 = vld [vmem:[%s2283_s1 + $0x660] sm:$0xff] }
  0x5c   :  { %1217 = vmatprep.subr.mxu1 %v258_v49  ;;  %1177 = vmatpush3.msra.mxu0 %v210_v50  ;;  %v309_v48 = vld [vmem:[%s2283_s1 + $0x760] sm:$0xff]  ;;  %v292_v50 = vld [vmem:[%s2283_s1 + $0x6d8] sm:$0xff] }
  0x5d   :  { %1218 = vmatpush3.msra.mxu1 %v242_v51  ;;  %1178 = vmatprep.subr.mxu0 %v225_v52  ;;  %v65_v49 = vld [vmem:[%s2284_s0 + $0x140] sm:$0xff]  ;;  %v324_v51 = vld [vmem:[%s2283_s1 + $0x7d8] sm:$0xff] }
  0x5e   :  { %1219 = vmatprep.subr.mxu1 %v257_v53  ;;  %1179 = vmatpush3.msra.mxu0 %v209_v54  ;;  %v68_v52 = vld [vmem:[%s2284_s0 + $0x158] sm:$0xff] }
  0x5f   :  { %1220 = vmatpush3.msra.mxu1 %v241_v55  ;;  %1180 = vmatprep.subr.mxu0 %v224_v56  ;;  %v276_v53 = vld [vmem:[%s2283_s1 + $0x658] sm:$0xff]  ;;  %v291_v55 = vld [vmem:[%s2283_s1 + $0x6d0] sm:$0xff] }
  0x60   :  { %1221 = vmatprep.subr.mxu1 %v256_v57  ;;  %1181 = vmatpush3.msra.mxu0 %v208_v58  ;;  %v308_v54 = vld [vmem:[%s2283_s1 + $0x758] sm:$0xff]  ;;  %v67_v56 = vld [vmem:[%s2284_s0 + $0x150] sm:$0xff] }
  0x61   :  { %1222 = vmatpush3.msra.mxu1 %v240_v59  ;;  %1182 = vmatprep.subr.mxu0 %v223_v60  ;;  %v323_v57 = vld [vmem:[%s2283_s1 + $0x7d0] sm:$0xff]  ;;  %v290_v60 = vld [vmem:[%s2283_s1 + $0x6c8] sm:$0xff] }
  0x62   :  { %1223 = vmatprep.subr.mxu1 %v255_v61  ;;  %1183 = vmatpush3.msra.mxu0 %v207_v62  ;;  %v275_v58 = vld [vmem:[%s2283_s1 + $0x650] sm:$0xff]  ;;  %v322_v61 = vld [vmem:[%s2283_s1 + $0x7c8] sm:$0xff] }
  0x63   :  { %1224 = vmatpush3.msra.mxu1 %v239_v63  ;;  %1184 = vmatprep.subr.mxu0 %v222_v0  ;;  %v307_v59 = vld [vmem:[%s2283_s1 + $0x750] sm:$0xff]  ;;  %v274_v62 = vld [vmem:[%s2283_s1 + $0x648] sm:$0xff]  ;;  %v289_v0 = vld [vmem:[%s2283_s1 + $0x6c0] sm:$0xff] }
  0x64   :  { %1225 = vmatprep.subr.mxu1 %v254_v1  ;;  %1185 = vmatpush3.msra.mxu0 %v206_v2  ;;  %v306_v63 = vld [vmem:[%s2283_s1 + $0x748] sm:$0xff]  ;;  %v321_v1 = vld [vmem:[%s2283_s1 + $0x7c0] sm:$0xff] }
  0x65   :  { %1226 = vmatpush3.msra.mxu1 %v238_v3  ;;  %1186 = vmatprep.subr.mxu0 %v221_v4  ;;  %v273_v2 = vld [vmem:[%s2283_s1 + $0x640] sm:$0xff]  ;;  %v288_v4 = vld [vmem:[%s2283_s1 + $0x6b8] sm:$0xff] }
  0x66   :  { %1227 = vmatprep.subr.mxu1 %v253_v5  ;;  %1187 = vmatpush3.msra.mxu0 %v205_v6  ;;  %v305_v3 = vld [vmem:[%s2283_s1 + $0x740] sm:$0xff]  ;;  %v320_v5 = vld [vmem:[%s2283_s1 + $0x7b8] sm:$0xff] }
  0x67   :  { %1228 = vmatpush3.msra.mxu1 %v237_v7  ;;  %1188 = vmatprep.subr.mxu0 %v220_v8  ;;  %v272_v6 = vld [vmem:[%s2283_s1 + $0x638] sm:$0xff]  ;;  %v287_v8 = vld [vmem:[%s2283_s1 + $0x6b0] sm:$0xff] }
  0x68   :  { %1229 = vmatprep.subr.mxu1 %v252_v9  ;;  %1189 = vmatpush3.msra.mxu0 %v204_v10  ;;  %v304_v7 = vld [vmem:[%s2283_s1 + $0x738] sm:$0xff]  ;;  %v319_v9 = vld [vmem:[%s2283_s1 + $0x7b0] sm:$0xff] }
  0x69   :  { %1230 = vmatpush3.msra.mxu1 %v236_v11  ;;  %1190 = vmatprep.subr.mxu0 %v219_v12  ;;  %v271_v10 = vld [vmem:[%s2283_s1 + $0x630] sm:$0xff]  ;;  %v286_v12 = vld [vmem:[%s2283_s1 + $0x6a8] sm:$0xff] }
  0x6a   :  { %1231 = vmatprep.subr.mxu1 %v251_v13  ;;  %1191 = vmatpush3.msra.mxu0 %v203_v14  ;;  %v303_v11 = vld [vmem:[%s2283_s1 + $0x730] sm:$0xff]  ;;  %v318_v13 = vld [vmem:[%s2283_s1 + $0x7a8] sm:$0xff] }
  0x6b   :  { %1232 = vmatpush3.msra.mxu1 %v235_v15  ;;  %1192 = vmatprep.subr.mxu0 %v218_v16  ;;  %v270_v14 = vld [vmem:[%s2283_s1 + $0x628] sm:$0xff]  ;;  %v285_v16 = vld [vmem:[%s2283_s1 + $0x6a0] sm:$0xff] }
  0x6c   :  { %1233 = vmatprep.subr.mxu1 %v250_v17  ;;  %1193 = vmatpush3.msra.mxu0 %v202_v18  ;;  %v302_v15 = vld [vmem:[%s2283_s1 + $0x728] sm:$0xff]  ;;  %v317_v17 = vld [vmem:[%s2283_s1 + $0x7a0] sm:$0xff] }
  0x6d   :  { %1234 = vmatpush3.msra.mxu1 %v234_v19  ;;  %1194 = vmatprep.subr.mxu0 %v217_v20  ;;  %v269_v18 = vld [vmem:[%s2283_s1 + $0x620] sm:$0xff]  ;;  %v284_v20 = vld [vmem:[%s2283_s1 + $0x698] sm:$0xff] }
  0x6e   :  { %1235 = vmatprep.subr.mxu1 %v249_v21  ;;  %1195 = vmatpush3.msra.mxu0 %v201_v22  ;;  %v301_v19 = vld [vmem:[%s2283_s1 + $0x720] sm:$0xff]  ;;  %v316_v21 = vld [vmem:[%s2283_s1 + $0x798] sm:$0xff] }
  0x6f   :  { %713 = vmatprep.mubr.f32.mxu0 %v34_v23  ;;  %1236 = vmatpush3.msra.mxu1 %v233_v24  ;;  %v268_v22 = vld [vmem:[%s2283_s1 + $0x618] sm:$0xff]  ;;  %v283_v24 = vld [vmem:[%s2283_s1 + $0x690] sm:$0xff] }
  0x70   :  { %714 = vmatmul.mubr.f32.vlgmr.msra.gmra.mxu0 %v33_v25  ;;  %793 = vmatprep.mubr.f32.mxu1 %v36_v26  ;;  %v300_v23 = vld [vmem:[%s2283_s1 + $0x718] sm:$0xff]  ;;  %v315_v25 = vld [vmem:[%s2283_s1 + $0x790] sm:$0xff] }
  0x71   :  { %1246 = vmatprep.subr.mxu0 %v296_v27  ;;  %1287 = vmatprep.subr.mxu1 %v328_v28  ;;  %v267_v26 = vld [vmem:[%s2283_s1 + $0x610] sm:$0xff]  ;;  %v282_v28 = vld [vmem:[%s2283_s1 + $0x688] sm:$0xff] }
  0x72   :  { %794 = vmatmul.mubr.f32.vlgmr.msra.gmra.mxu1 %v35_v29  ;;  %1247 = vmatpush3.msra.mxu0 %v280_v30  ;;  %v299_v27 = vld [vmem:[%s2283_s1 + $0x710] sm:$0xff]  ;;  %v314_v29 = vld [vmem:[%s2283_s1 + $0x788] sm:$0xff] }
  0x73   :  { %1288 = vmatpush3.msra.mxu1 %v312_v31  ;;  %1248 = vmatprep.subr.mxu0 %v295_v32  ;;  %v266_v30 = vld [vmem:[%s2283_s1 + $0x608] sm:$0xff]  ;;  %v281_v32 = vld [vmem:[%s2283_s1 + $0x680] sm:$0xff] }
  0x74   :  { %1289 = vmatprep.subr.mxu1 %v327_v33  ;;  %718 = vmatprep.mubr.f32.mxu0 %v50_v34  ;;  %v298_v31 = vld [vmem:[%s2283_s1 + $0x708] sm:$0xff]  ;;  %v313_v33 = vld [vmem:[%s2283_s1 + $0x780] sm:$0xff] }
  0x75   :  { %1249 = vmatpush3.msra.mxu0 %v279_v35  ;;  %1290 = vmatpush3.msra.mxu1 %v311_v36  ;;  %v265_v34 = vld [vmem:[%s2283_s1 + $0x600] sm:$0xff]  ;;  %v38_v35 = vld [vmem:[%s2284_s0 + $0x68] sm:$0xff] }
  0x76   :  { %719 = vmatmul.mubr.f32.gmra.mxu0 %v49_v37  ;;  %1250 = vmatprep.subr.mxu0 %v294_v38  ;;  %v297_v36 = vld [vmem:[%s2283_s1 + $0x700] sm:$0xff]  ;;  %v40_v37 = vld [vmem:[%s2284_s0 + $0x78] sm:$0xff] }
  0x77   :  { %1291 = vmatprep.subr.mxu1 %v326_v39  ;;  %798 = vmatprep.mubr.f32.mxu1 %v52_v40  ;;  %v37_v38 = vld [vmem:[%s2284_s0 + $0x60] sm:$0xff]  ;;  %v39_v39 = vld [vmem:[%s2284_s0 + $0x70] sm:$0xff]  ;;  %v54_v40 = vld [vmem:[%s2284_s0 + $0xe8] sm:$0xff] }
  0x78   :  { %1251 = vmatpush3.msra.mxu0 %v278_v41  ;;  %1292 = vmatpush3.msra.mxu1 %v310_v42  ;;  %v56_v41 = vld [vmem:[%s2284_s0 + $0xf8] sm:$0xff]  ;;  %v53_v42 = vld [vmem:[%s2284_s0 + $0xe0] sm:$0xff] }
  0x79   :  { %1252 = vmatprep.subr.mxu0 %v293_v43  ;;  %799 = vmatmul.mubr.f32.gmra.mxu1 %v51_v44  ;;  %v55_v43 = vld [vmem:[%s2284_s0 + $0xf0] sm:$0xff]  ;;  %v70_v44 = vld [vmem:[%s2284_s0 + $0x168] sm:$0xff] }
  0x7a   :  { %1293 = vmatprep.subr.mxu1 %v325_v45  ;;  %723 = vmatprep.mubr.f32.mxu0 %v66_v46  ;;  %v72_v45 = vld [vmem:[%s2284_s0 + $0x178] sm:$0xff]  ;;  %v69_v46 = vld [vmem:[%s2284_s0 + $0x160] sm:$0xff] }
  0x7b   :  { %1253 = vmatpush3.msra.mxu0 %v277_v47  ;;  %1294 = vmatpush3.msra.mxu1 %v309_v48  ;;  %v71_v47 = vld [vmem:[%s2284_s0 + $0x170] sm:$0xff]  ;;  %v1329_v48 = vmov 0.0  }
  0x7c   :  { %724 = vmatmul.mubr.f32.gmra.mxu0 %v65_v49  ;;  %1254 = vmatprep.subr.mxu0 %v292_v50  ;;  %19 = vst.msk [vmem:[#allocation2] sm:$0xff] %vm18_vm0, %v1329_v48  ;;  %20 = vst.msk [vmem:[#allocation2 + $0x8] sm:$0xff] %vm18_vm0, %v1329_v48 }
  0x7d   :  { %1295 = vmatprep.subr.mxu1 %v324_v51  ;;  %803 = vmatprep.mubr.f32.mxu1 %v68_v52  ;;  %21 = vst.msk [vmem:[#allocation2 + $0x10] sm:$0xff] %vm18_vm0, %v1329_v48 }
  0x7e   :  { %1255 = vmatpush3.msra.mxu0 %v276_v53  ;;  %1296 = vmatpush3.msra.mxu1 %v308_v54 }
  0x7f   :  { %1256 = vmatprep.subr.mxu0 %v291_v55  ;;  %804 = vmatmul.mubr.f32.gmra.mxu1 %v67_v56 }
  0x80   :  { %1297 = vmatprep.subr.mxu1 %v323_v57  ;;  %1257 = vmatpush3.msra.mxu0 %v275_v58 }
  0x81   :  { %1298 = vmatpush3.msra.mxu1 %v307_v59  ;;  %1258 = vmatprep.subr.mxu0 %v290_v60 }
  0x82   :  { %1299 = vmatprep.subr.mxu1 %v322_v61  ;;  %1259 = vmatpush3.msra.mxu0 %v274_v62 }
  0x83   :  { %1300 = vmatpush3.msra.mxu1 %v306_v63  ;;  %1260 = vmatprep.subr.mxu0 %v289_v0 }
  0x84   :  { %1301 = vmatprep.subr.mxu1 %v321_v1  ;;  %1261 = vmatpush3.msra.mxu0 %v273_v2 }
  0x85   :  { %1302 = vmatpush3.msra.mxu1 %v305_v3  ;;  %1262 = vmatprep.subr.mxu0 %v288_v4 }
  0x86   :  { %1303 = vmatprep.subr.mxu1 %v320_v5  ;;  %1263 = vmatpush3.msra.mxu0 %v272_v6 }
  0x87   :  { %1304 = vmatpush3.msra.mxu1 %v304_v7  ;;  %1264 = vmatprep.subr.mxu0 %v287_v8 }
  0x88   :  { %1305 = vmatprep.subr.mxu1 %v319_v9  ;;  %1265 = vmatpush3.msra.mxu0 %v271_v10 }
  0x89   :  { %1306 = vmatpush3.msra.mxu1 %v303_v11  ;;  %1266 = vmatprep.subr.mxu0 %v286_v12 }
  0x8a   :  { %1307 = vmatprep.subr.mxu1 %v318_v13  ;;  %1267 = vmatpush3.msra.mxu0 %v270_v14 }
  0x8b   :  { %1308 = vmatpush3.msra.mxu1 %v302_v15  ;;  %1268 = vmatprep.subr.mxu0 %v285_v16 }
  0x8c   :  { %1309 = vmatprep.subr.mxu1 %v317_v17  ;;  %1269 = vmatpush3.msra.mxu0 %v269_v18 }
  0x8d   :  { %1310 = vmatpush3.msra.mxu1 %v301_v19  ;;  %1270 = vmatprep.subr.mxu0 %v284_v20 }
  0x8e   :  { %1311 = vmatprep.subr.mxu1 %v316_v21  ;;  %1271 = vmatpush3.msra.mxu0 %v268_v22 }
  0x8f   :  { %1312 = vmatpush3.msra.mxu1 %v300_v23  ;;  %1272 = vmatprep.subr.mxu0 %v283_v24 }
  0x90   :  { %1313 = vmatprep.subr.mxu1 %v315_v25  ;;  %1273 = vmatpush3.msra.mxu0 %v267_v26 }
  0x91   :  { %1314 = vmatpush3.msra.mxu1 %v299_v27  ;;  %1274 = vmatprep.subr.mxu0 %v282_v28 }
  0x92   :  { %1315 = vmatprep.subr.mxu1 %v314_v29  ;;  %1275 = vmatpush3.msra.mxu0 %v266_v30 }
  0x93   :  { %1316 = vmatpush3.msra.mxu1 %v298_v31  ;;  %1276 = vmatprep.subr.mxu0 %v281_v32 }
  0x94   :  { %1317 = vmatprep.subr.mxu1 %v313_v33  ;;  %1277 = vmatpush3.msra.mxu0 %v265_v34 }
  0x95   :  { %873 = vmatprep.mubr.f32.mxu0 %v38_v35  ;;  %1318 = vmatpush3.msra.mxu1 %v297_v36 }
  0x96   :  { %953 = vmatprep.mubr.f32.mxu1 %v40_v37  ;;  %874 = vmatmul.mubr.f32.vlgmr.msra.gmra.mxu0 %v37_v38 }
  0x97   :  { %954 = vmatmul.mubr.f32.vlgmr.msra.gmra.mxu1 %v39_v39  ;;  %878 = vmatprep.mubr.f32.mxu0 %v54_v40 }
  0x98   :  { %958 = vmatprep.mubr.f32.mxu1 %v56_v41 }
  0x9a   :  { %879 = vmatmul.mubr.f32.gmra.mxu0 %v53_v42 }
  0x9b   :  { %959 = vmatmul.mubr.f32.gmra.mxu1 %v55_v43  ;;  %883 = vmatprep.mubr.f32.mxu0 %v70_v44 }
  0x9c   :  { %963 = vmatprep.mubr.f32.mxu1 %v72_v45 }
  0x9e   :  { %884 = vmatmul.mubr.f32.gmra.mxu0 %v69_v46 }
  0x9f   :  { %964 = vmatmul.mubr.f32.gmra.mxu1 %v71_v47 }
  0xe4   :  { %v1032_v49 = vpop.f32.mrf.mxu0 }
  0xe5   :  { %v1073_v50 = vpop.f32.mrf.mxu1 }
  0xe6   :  { %v1033_v51 = vpop.f32.mrf.mxu0 }
  0xe7   :  { %v1074_v52 = vpop.f32.mrf.mxu1  ;;  %v1034_v15 = vadd.f32 %v1033_v51, %v1032_v49 }
  0xe8   :  { %v1075_v16 = vadd.f32 %v1074_v52, %v1073_v50 }
  0xea   :  { %v476_v22 = vadd.f32 %v1075_v16, %v1034_v15 }
  0xfd   :  { %v1035_v53 = vpop.f32.mrf.mxu0 }
  0xfe   :  { %v1076_v54 = vpop.f32.mrf.mxu1 }
  0xff   :  { %v1036_v55 = vpop.f32.mrf.mxu0 }
 0x100   :  { %v1077_v56 = vpop.f32.mrf.mxu1  ;;  %v1037_v18 = vadd.f32 %v1036_v55, %v1035_v53 }
 0x101   :  { %v1078_v19 = vadd.f32 %v1077_v56, %v1076_v54 }
 0x103   :  { %v1038_v57 = vpop.f32.mrf.mxu0  ;;  %v481_v26 = vadd.f32 %v1078_v19, %v1037_v18  ;;  %v999_v19 = vld [vmem:[%s2285_s2] ss:$0 sm:$0xff] }
 0x104   :  { %v1079_v58 = vpop.f32.mrf.mxu1 }
 0x105   :  { %v1039_v59 = vpop.f32.mrf.mxu0 }
 0x106   :  { %v1080_v60 = vpop.f32.mrf.mxu1  ;;  %v1040_v29 = vadd.f32 %v1039_v59, %v1038_v57 }
 0x107   :  { %v1081_v30 = vadd.f32 %v1080_v60, %v1079_v58  ;;  %v22_v60 = vld [vmem:[#allocation2] sm:$0xff] }
 0x109   :  { %v486_v39 = vadd.f32 %v1081_v30, %v1040_v29 }
 0x10a   :  { %v1114_v61 = vpop.f32.mrf.mxu0 }
 0x10c   :  { %v1155_v62 = vpop.f32.mrf.mxu1  ;;  %v1115_v63 = vpop.f32.mrf.mxu0 }
 0x10d   :  { %v1116_v17 = vadd.f32 %v1115_v63, %v1114_v61 }
 0x10e   :  { %v1156_v0 = vpop.f32.mrf.mxu1 }
 0x10f   :  { %v556_v24 = vadd.f32 %v1116_v17, %v476_v22  ;;  %v1157_v25 = vadd.f32 %v1156_v0, %v1155_v62  ;;  %v24_v17 = vld [vmem:[#allocation2 + $0x10] sm:$0xff] }
 0x110   :  { %v1117_v1 = vpop.f32.mrf.mxu0 }
 0x111   :  { %v636_v34 = vadd.f32 %v1157_v25, %v556_v24 }
 0x112   :  { %v1118_v3 = vpop.f32.mrf.mxu0 }
 0x113   :  { %v1158_v2 = vpop.f32.mrf.mxu1  ;;  %v1119_v23 = vadd.f32 %v1118_v3, %v1117_v1 }
 0x115   :  { %v1159_v4 = vpop.f32.mrf.mxu1  ;;  %v561_v32 = vadd.f32 %v1119_v23, %v481_v26 }
 0x116   :  { %v1120_v5 = vpop.f32.mrf.mxu0  ;;  %v1160_v33 = vadd.f32 %v1159_v4, %v1158_v2 }
 0x118   :  { %v1121_v7 = vpop.f32.mrf.mxu0  ;;  %v641_v42 = vadd.f32 %v1160_v33, %v561_v32 }
 0x119   :  { %v1161_v6 = vpop.f32.mrf.mxu1  ;;  %v1122_v35 = vadd.f32 %v1121_v7, %v1120_v5 }
 0x11b   :  { %v1162_v8 = vpop.f32.mrf.mxu1  ;;  %v566_v45 = vadd.f32 %v1122_v35, %v486_v39 }
 0x11c   :  { %v1163_v46 = vadd.f32 %v1162_v8, %v1161_v6  ;;  %v23_v8 = vld [vmem:[#allocation2 + $0x8] sm:$0xff] }
 0x11e   :  { %v646_v56 = vadd.f32 %v1163_v46, %v566_v45 }
 0x130   :  { %v1196_v9 = vpop.f32.mrf.mxu0 }
 0x132   :  { %v1237_v10 = vpop.f32.mrf.mxu1  ;;  %v1197_v11 = vpop.f32.mrf.mxu0 }
 0x133   :  { %v1198_v31 = vadd.f32 %v1197_v11, %v1196_v9 }
 0x134   :  { %v1238_v12 = vpop.f32.mrf.mxu1 }
 0x135   :  { %v716_v40 = vadd.f32 %v1198_v31, %v636_v34  ;;  %v1239_v41 = vadd.f32 %v1238_v12, %v1237_v10 }
 0x136   :  { %v1199_v13 = vpop.f32.mrf.mxu0 }
 0x137   :  { %v796_v51 = vadd.f32 %v1239_v41, %v716_v40 }
 0x138   :  { %v1200_v20 = vpop.f32.mrf.mxu0 }
 0x139   :  { %v1240_v14 = vpop.f32.mrf.mxu1  ;;  %v1201_v36 = vadd.f32 %v1200_v20, %v1199_v13 }
 0x13b   :  { %v1241_v21 = vpop.f32.mrf.mxu1  ;;  %v721_v47 = vadd.f32 %v1201_v36, %v641_v42 }
 0x13c   :  { %v1202_v27 = vpop.f32.mrf.mxu0  ;;  %v1242_v48 = vadd.f32 %v1241_v21, %v1240_v14 }
 0x13e   :  { %v1203_v37 = vpop.f32.mrf.mxu0  ;;  %v801_v59 = vadd.f32 %v1242_v48, %v721_v47 }
 0x13f   :  { %v1243_v28 = vpop.f32.mrf.mxu1  ;;  %v1204_v52 = vadd.f32 %v1203_v37, %v1202_v27 }
 0x141   :  { %v1244_v38 = vpop.f32.mrf.mxu1  ;;  %v726_v63 = vadd.f32 %v1204_v52, %v646_v56 }
 0x142   :  { %v1245_v0 = vadd.f32 %v1244_v38, %v1243_v28 }
 0x144   :  { %v806_v11 = vadd.f32 %v1245_v0, %v726_v63 }
 0x156   :  { %v1278_v43 = vpop.f32.mrf.mxu0 }
 0x157   :  { %v1319_v44 = vpop.f32.mrf.mxu1 }
 0x158   :  { %v1279_v49 = vpop.f32.mrf.mxu0 }
 0x159   :  { %v1320_v50 = vpop.f32.mrf.mxu1  ;;  %v1280_v53 = vadd.f32 %v1279_v49, %v1278_v43 }
 0x15a   :  { %v1281_v54 = vpop.f32.mrf.mxu0  ;;  %v1321_v58 = vadd.f32 %v1320_v50, %v1319_v44 }
 0x15b   :  { %v1322_v55 = vpop.f32.mrf.mxu1  ;;  %v876_v57 = vadd.f32 %v1280_v53, %v796_v51 }
 0x15c   :  { %v1282_v61 = vpop.f32.mrf.mxu0 }
 0x15d   :  { %v1323_v62 = vpop.f32.mrf.mxu1  ;;  %v956_v1 = vadd.f32 %v1321_v58, %v876_v57  ;;  %v1283_v2 = vadd.f32 %v1282_v61, %v1281_v54 }
 0x15e   :  { %v1284_v3 = vpop.f32.mrf.mxu0  ;;  %v1324_v7 = vadd.f32 %v1323_v62, %v1322_v55 }
 0x15f   :  { %v1325_v4 = vpop.f32.mrf.mxu1  ;;  %v969_v5 = vadd.f32 %v956_v1, %v22_v60  ;;  %v881_v6 = vadd.f32 %v1283_v2, %v801_v59 }
 0x160   :  { %v1285_v9 = vpop.f32.mrf.mxu0 }
 0x161   :  { %v1326_v10 = vpop.f32.mrf.mxu1  ;;  %973 = vst.msk [vmem:[#allocation2] sm:$0xff] %vm18_vm0, %v969_v5  ;;  %v961_v12 = vadd.f32 %v1324_v7, %v881_v6  ;;  %v1286_v13 = vadd.f32 %v1285_v9, %v1284_v3 }
 0x162   :  { %v1327_v16 = vadd.f32 %v1326_v10, %v1325_v4 }
 0x163   :  { %v970_v14 = vadd.f32 %v961_v12, %v23_v8  ;;  %v886_v15 = vadd.f32 %v1286_v13, %v806_v11 }
 0x165   :  { %974 = vst.msk [vmem:[#allocation2 + $0x8] sm:$0xff] %vm18_vm0, %v970_v14  ;;  %v966_v18 = vadd.f32 %v1327_v16, %v886_v15 }
 0x167   :  { %v971_v20 = vadd.f32 %v966_v18, %v24_v17 }
 0x168   :  { %v979_v21 = vld [vmem:[#allocation2] sm:$0xff] }
 0x169   :  { %v989_v22 = vadd.f32 %v999_v19, %v979_v21  ;;  %975 = vst.msk [vmem:[#allocation2 + $0x10] sm:$0xff] %vm18_vm0, %v971_v20 }
 0x16b   :  { %992 = vst.msk [vmem:[%s2286_s3] sm:$0xff] %vm18_vm0, %v989_v22 }
 0x16c   :  { %v980_v23 = vld [vmem:[#allocation2 + $0x8] sm:$0xff] }
 0x16d   :  { %v990_v24 = vadd.f32 %v999_v19, %v980_v23 }
 0x16f   :  { %993 = vst.msk [vmem:[%s2286_s3 + $0x8] sm:$0xff] %vm18_vm0, %v990_v24 }
 0x170   :  { %v981_v25 = vld [vmem:[#allocation2 + $0x10] sm:$0xff] }
 0x171   :  { %v991_v26 = vadd.f32 %v999_v19, %v981_v25 }
 0x173   :  { %994 = vst.msk [vmem:[%s2286_s3 + $0x10] sm:$0xff] %vm18_vm0, %v991_v26 }

</bundles_post_ra>
